<compile_context>
chip_gen: v7x
topology: tpu7x:2x2x1
jax: 0.10.0
libtpu: 0.0.40
codegen_flags: <defaults>
</compile_context>

<pallas_src>
import math
import functools

import jax
import jax.numpy as jnp
from jax.experimental import pallas as pl
from jax.experimental.pallas import tpu as pltpu


_VMEM_LIMIT = 64 * 1024 * 1024  # <= physical VMEM on every generation (v7x = 64 MiB)


# ----------------------------------------------------------------------------
# Tile-size helpers
# ----------------------------------------------------------------------------
def _pick_tile(dim, candidates):
    """Largest candidate that divides `dim`; else the full dim (always legal)."""
    for c in candidates:
        if dim >= c and dim % c == 0:
            return c
    return dim


def _pick_q_tile(S, H, num_heads, itemsize, emit_probs,
                 budget_bytes=40 * 1024 * 1024):
    """Largest q-tile (multiple of 8 dividing S, or full S) whose double-buffered
    VMEM footprint stays under `budget_bytes` (budget sized for v7x 64 MiB)."""
    d = H // num_heads
    cands = [c for c in (512, 256, 128, 64, 32, 16, 8) if c <= S and S % c == 0]
    if not cands:
        cands = [S]
    kv_bytes = 2 * 2 * S * H * itemsize                  # K and V, double-buffered
    for tq in cands:
        q_bytes = 2 * tq * H * itemsize                  # Q in, double-buffered
        out_bytes = 2 * (tq * H + num_heads * tq * d) * itemsize
        if emit_probs:
            out_bytes += 2 * num_heads * tq * S * itemsize
        if kv_bytes + q_bytes + out_bytes <= budget_bytes:
            return tq
    return cands[-1]


# ----------------------------------------------------------------------------
# Kernel 1: tiled Linear (y = x @ W + b) over M = B*S, N = Hout, K = Hin.
# ----------------------------------------------------------------------------
def _linear_kernel(x_ref, w_ref, b_ref, o_ref, acc_ref):
    @pl.when(pl.program_id(2) == 0)
    def _():
        acc_ref[...] = jnp.zeros_like(acc_ref)

    acc_ref[...] += jnp.dot(x_ref[...], w_ref[...],
                            preferred_element_type=jnp.float32)

    @pl.when(pl.program_id(2) == pl.num_programs(2) - 1)
    def _():
        o_ref[...] = (acc_ref[...] + b_ref[...].astype(jnp.float32)
                      ).astype(o_ref.dtype)


def linear(x2d, w, b):
    """x2d: [M, K], w: [K, N], b: [N] -> [M, N]."""
    M, K = x2d.shape
    K2, N = w.shape
    assert K == K2
    tm = _pick_tile(M, (512, 256, 128, 64, 32, 16, 8))
    tn = _pick_tile(N, (512, 256, 128))
    tk = _pick_tile(K, (512, 256, 128))
    grid = (M // tm, N // tn, K // tk)
    return pl.pallas_call(
        _linear_kernel,
        out_shape=jax.ShapeDtypeStruct((M, N), x2d.dtype),
        grid=grid,
        in_specs=[
            pl.BlockSpec((tm, tk), lambda i, j, k: (i, k)),
            pl.BlockSpec((tk, tn), lambda i, j, k: (k, j)),
            pl.BlockSpec((1, tn), lambda i, j, k: (0, j)),
        ],
        out_specs=pl.BlockSpec((tm, tn), lambda i, j, k: (i, j)),
        scratch_shapes=[pltpu.VMEM((tm, tn), jnp.float32)],
        compiler_params=pltpu.CompilerParams(
            dimension_semantics=("parallel", "parallel", "arbitrary"),
            vmem_limit_bytes=_VMEM_LIMIT),
    )(x2d, w, b.reshape(1, N))


# ----------------------------------------------------------------------------
# Kernel 2: multi-head attention core.  One grid step = (batch element, q-tile),
# all heads processed per step (static unroll -> K/V DMA amortised over heads).
# Inputs stay in merged [B, S, H] layout (head slicing on the lane dim inside
# the kernel -> no wrapper transposes).
# Outputs: merged context [B, S, H] (single lane-dense store per tile), the
# per-head context (reception field) [B, nH, S, d], and optionally softmax
# probs [B, nH, S, S].
# ----------------------------------------------------------------------------
def _mha_kernel(q_ref, k_ref, v_ref, *out_refs, num_heads, scale, emit_probs):
    if emit_probs:
        ctx_ref, rf_ref, probs_ref = out_refs
    else:
        ctx_ref, rf_ref = out_refs
        probs_ref = None

    H = q_ref.shape[-1]
    d = H // num_heads

    q = q_ref[0] * scale            # (tq, H); 1/sqrt(d) folded into Q (tq*H work)
    k = k_ref[0]                    # (S, H)
    v = v_ref[0]                    # (S, H)

    ctx_heads = []
    for h in range(num_heads):      # static unroll over heads
        lo, hi = h * d, (h + 1) * d
        q_h = q[:, lo:hi]            # (tq, d)
        k_h = k[:, lo:hi]            # (S, d)
        v_h = v[:, lo:hi]            # (S, d)

        # q_h @ k_h^T without materialising a transpose of K.
        scores = jax.lax.dot_general(
            q_h, k_h, (((1,), (1,)), ((), ())),
            preferred_element_type=jnp.float32)            # (tq, S)

        m = jnp.max(scores, axis=-1, keepdims=True)
        e = jnp.exp(scores - m)
        s = jnp.sum(e, axis=-1, keepdims=True)
        p = e * pl.reciprocal(s, approx=True)              # softmax, EUP recip

        if emit_probs:
            probs_ref[0, h] = p.astype(probs_ref.dtype)    # dense (tq, S) store

        ctx = jnp.dot(p.astype(v_h.dtype), v_h,
                      preferred_element_type=jnp.float32)  # (tq, d)
        ctx_heads.append(ctx)
        rf_ref[0, h] = ctx.astype(rf_ref.dtype)            # dense (tq, d) store

    # Single lane-dense store of the merged [tq, H] context slab (avoids
    # num_heads masked lane-slice stores when d < 128).
    ctx_ref[0] = jnp.concatenate(ctx_heads, axis=-1).astype(ctx_ref.dtype)


def attention_core(q, k, v, num_heads, emit_probs, probs_dtype=None):
    """q, k, v: [B, S, H] (merged-head layout)."""
    B, S, H = q.shape
    d = H // num_heads
    scale = 1.0 / math.sqrt(d)
    tq = _pick_q_tile(S, H, num_heads, jnp.dtype(q.dtype).itemsize, emit_probs)
    grid = (B, S // tq)

    out_shapes = [
        jax.ShapeDtypeStruct((B, S, H), q.dtype),                # merged context
        jax.ShapeDtypeStruct((B, num_heads, S, d), q.dtype),     # reception field
    ]
    out_specs = [
        pl.BlockSpec((1, tq, H), lambda b, i: (b, i, 0)),
        pl.BlockSpec((1, num_heads, tq, d), lambda b, i: (b, 0, i, 0)),
    ]
    if emit_probs:
        out_shapes.append(
            jax.ShapeDtypeStruct((B, num_heads, S, S), probs_dtype or q.dtype))
        out_specs.append(
            pl.BlockSpec((1, num_heads, tq, S), lambda b, i: (b, 0, i, 0)))

    kern = functools.partial(_mha_kernel, num_heads=num_heads, scale=scale,
                             emit_probs=emit_probs)
    outs = pl.pallas_call(
        kern,
        out_shape=tuple(out_shapes),
        grid=grid,
        in_specs=[
            pl.BlockSpec((1, tq, H), lambda b, i: (b, i, 0)),
            pl.BlockSpec((1, S, H), lambda b, i: (b, 0, 0)),   # re-DMA'd only when b changes
            pl.BlockSpec((1, S, H), lambda b, i: (b, 0, 0)),
        ],
        out_specs=tuple(out_specs),
        compiler_params=pltpu.CompilerParams(
            dimension_semantics=("parallel", "parallel"),
            vmem_limit_bytes=_VMEM_LIMIT),
    )(q, k, v)

    if emit_probs:
        ctx, rf, probs = outs
    else:
        (ctx, rf), probs = outs, None
    return ctx, rf, probs


# ----------------------------------------------------------------------------
# Module wrapper (mirrors Attention.forward(q, hidden_states), eval mode).
# ----------------------------------------------------------------------------
def init_attention_params(key, hidden_size):
    ks = jax.random.split(key, 8)
    s = 1.0 / math.sqrt(hidden_size)

    def w(k):
        return jax.random.uniform(k, (hidden_size, hidden_size),
                                  jnp.float32, -s, s)

    def b(k):
        return jax.random.uniform(k, (hidden_size,), jnp.float32, -s, s)

    return {
        "wq": w(ks[0]), "bq": b(ks[1]),
        "wk": w(ks[2]), "bk": b(ks[3]),
        "wv": w(ks[4]), "bv": b(ks[5]),
        "wo": w(ks[6]), "bo": b(ks[7]),
    }


def attention_forward(params, q, hidden_states, num_heads, vis=True):
    """Returns (attention_output, weights, reception_field)."""
    B, S, H = hidden_states.shape
    x2d = hidden_states.reshape(B * S, H)

    if q is None:
        # Fused Q/K/V projection: one HBM pass over hidden_states, 3x-wide N.
        # (In a real model these weights would be pre-fused once, outside jit.)
        wqkv = jnp.concatenate([params["wq"], params["wk"], params["wv"]], axis=1)
        bqkv = jnp.concatenate([params["bq"], params["bk"], params["bv"]])
        qkv = linear(x2d, wqkv, bqkv)                        # [B*S, 3H]
        mixed_q = qkv[:, 0 * H:1 * H].reshape(B, S, H)
        mixed_k = qkv[:, 1 * H:2 * H].reshape(B, S, H)
        mixed_v = qkv[:, 2 * H:3 * H].reshape(B, S, H)
    else:
        # External query: only K/V projections (still fused into one matmul).
        wkv = jnp.concatenate([params["wk"], params["wv"]], axis=1)
        bkv = jnp.concatenate([params["bk"], params["bv"]])
        kv = linear(x2d, wkv, bkv)                           # [B*S, 2H]
        mixed_q = q
        mixed_k = kv[:, 0 * H:1 * H].reshape(B, S, H)
        mixed_v = kv[:, 1 * H:2 * H].reshape(B, S, H)

    ctx_merged, reception_field, probs = attention_core(
        mixed_q, mixed_k, mixed_v, num_heads, emit_probs=vis)

    out2d = linear(ctx_merged.reshape(B * S, H), params["wo"], params["bo"])
    attention_output = out2d.reshape(B, S, H)
    weights = probs if vis else None
    # attn_dropout / proj_dropout: identity in eval mode.
    # TODO(synk): flash-style KV tiling for very long S when vis=False (probs
    # output is incompatible with online-softmax streaming).
    return attention_output, weights, reception_field


# ----------------------------------------------------------------------------
# Pure-JAX reference for the sanity check.
# ----------------------------------------------------------------------------
def _ref_forward(params, q, hidden_states, num_heads):
    B, S, H = hidden_states.shape
    d = H // num_heads
    mq = hidden_states @ params["wq"] + params["bq"] if q is None else q
    mk = hidden_states @ params["wk"] + params["bk"]
    mv = hidden_states @ params["wv"] + params["bv"]
    sh = lambda x: x.reshape(B, S, num_heads, d).transpose(0, 2, 1, 3)
    ql, kl, vl = sh(mq), sh(mk), sh(mv)
    scores = jnp.einsum("bhqd,bhkd->bhqk", ql, kl) / math.sqrt(d)
    probs = jax.nn.softmax(scores, axis=-1)
    ctx = jnp.einsum("bhqk,bhkd->bhqd", probs, vl)
    out = ctx.transpose(0, 2, 1, 3).reshape(B, S, H) @ params["wo"] + params["bo"]
    return out, probs, ctx


if __name__ == "__main__":
    B, S, H, num_heads = 2, 8, 32, 4  # hidden_size=32, num_heads=4 -> head_dim=8

    key = jax.random.PRNGKey(0)
    k_param, k_x = jax.random.split(key)
    params = init_attention_params(k_param, H)
    hidden_states = jax.random.normal(k_x, (B, S, H), jnp.float32)

    # vis=True path (emits weights + reception_field)
    out, weights, rf = attention_forward(params, None, hidden_states,
                                         num_heads, vis=True)
    jax.block_until_ready((out, weights, rf))

    # vis=False path (no probs output / HBM write)
    out_nv, weights_nv, rf_nv = attention_forward(params, None, hidden_states,
                                                  num_heads, vis=False)
    jax.block_until_ready((out_nv, rf_nv))
    assert weights_nv is None

    # Sanity check against pure-JAX reference.  Tolerances account for
    # pl.reciprocal(approx=True) in the softmax normalisation.
    ro, rw, rr = _ref_forward(params, None, hidden_states, num_heads)
    assert jnp.allclose(out, ro, atol=1e-2, rtol=1e-2), "output mismatch"
    assert jnp.allclose(weights, rw, atol=1e-2, rtol=1e-2), "weights mismatch"
    assert jnp.allclose(rf, rr, atol=1e-2, rtol=1e-2), "reception_field mismatch"
    assert jnp.allclose(out_nv, ro, atol=1e-2, rtol=1e-2), "vis=False output mismatch"
    assert jnp.allclose(rf_nv, rr, atol=1e-2, rtol=1e-2), "vis=False rf mismatch"

    print("KERNEL_OK")
</pallas_src>

<mosaic_0001>
module attributes {stable_mosaic.version = 11 : i64} {
  func.func @_linear_kernel(%arg0: i32, %arg1: i32, %arg2: i32, %arg3: memref<16x32xf32, #tpu.memory_space<vmem>>, %arg4: memref<32x96xf32, #tpu.memory_space<vmem>>, %arg5: memref<1x96xf32, #tpu.memory_space<vmem>>, %arg6: memref<16x96xf32, #tpu.memory_space<vmem>>, %arg7: memref<16x96xf32, #tpu.memory_space<vmem>>) attributes {dimension_semantics = [#tpu.dimension_semantics<parallel>, #tpu.dimension_semantics<parallel>, #tpu.dimension_semantics<arbitrary>], iteration_bounds = array<i64: 1, 1, 1>, scalar_prefetch = 0 : i64, scratch_operands = 1 : i64, tpu.core_type = #tpu.core_type<tc>, window_params = [{transform_indices = @transform_0, window_bounds = array<i64: 16, 32>}, {transform_indices = @transform_1, window_bounds = array<i64: 32, 96>}, {transform_indices = @transform_2, window_bounds = array<i64: 1, 96>}, {transform_indices = @transform_3, window_bounds = array<i64: 16, 96>}]} {
    %c0_i32 = arith.constant 0 : i32
    %0 = arith.cmpi eq, %arg2, %c0_i32 : i32
    %1 = arith.extui %0 : i1 to i32
    %c0_i32_0 = arith.constant 0 : i32
    %2 = arith.cmpi ne, %1, %c0_i32_0 : i32
    scf.if %2 {
      %cst_10 = arith.constant 0.000000e+00 : f32
      %12 = vector.broadcast %cst_10 : f32 to vector<16x96xf32>
      %c0_11 = arith.constant 0 : index
      %c0_12 = arith.constant 0 : index
      %13 = vector.load %arg7[%c0_11, %c0_12] : memref<16x96xf32, #tpu.memory_space<vmem>>, vector<16x96xf32>
      tpu.vector_store %arg7[%c0_11, %c0_12], %12 {strides = array<i32>} : memref<16x96xf32, #tpu.memory_space<vmem>>, vector<16x96xf32>,
    } else {
    }
    %c0 = arith.constant 0 : index
    %c0_1 = arith.constant 0 : index
    %3 = vector.load %arg7[%c0, %c0_1] : memref<16x96xf32, #tpu.memory_space<vmem>>, vector<16x96xf32>
    %c0_2 = arith.constant 0 : index
    %c0_3 = arith.constant 0 : index
    %4 = vector.load %arg3[%c0_2, %c0_3] : memref<16x32xf32, #tpu.memory_space<vmem>>, vector<16x32xf32>
    %c0_4 = arith.constant 0 : index
    %c0_5 = arith.constant 0 : index
    %5 = vector.load %arg4[%c0_4, %c0_5] : memref<32x96xf32, #tpu.memory_space<vmem>>, vector<32x96xf32>
    %cst = arith.constant dense<0.000000e+00> : vector<16x96xf32>
    %6 = tpu.matmul %4, %5, %cst {dimension_numbers = #tpu.dot_dimension_numbers<[1], [0], [0], [1], [0, 0, 1, 1], [], []>} : vector<16x32xf32>, vector<32x96xf32>, vector<16x96xf32> -> vector<16x96xf32>
    %7 = arith.addf %3, %6 : vector<16x96xf32>
    %c0_6 = arith.constant 0 : index
    %c0_7 = arith.constant 0 : index
    %8 = vector.load %arg7[%c0_6, %c0_7] : memref<16x96xf32, #tpu.memory_space<vmem>>, vector<16x96xf32>
    tpu.vector_store %arg7[%c0_6, %c0_7], %7 {strides = array<i32>} : memref<16x96xf32, #tpu.memory_space<vmem>>, vector<16x96xf32>,
    %c0_i32_8 = arith.constant 0 : i32
    %9 = arith.cmpi eq, %arg2, %c0_i32_8 : i32
    %10 = arith.extui %9 : i1 to i32
    %c0_i32_9 = arith.constant 0 : i32
    %11 = arith.cmpi ne, %10, %c0_i32_9 : i32
    scf.if %11 {
      %c0_10 = arith.constant 0 : index
      %c0_11 = arith.constant 0 : index
      %12 = vector.load %arg7[%c0_10, %c0_11] : memref<16x96xf32, #tpu.memory_space<vmem>>, vector<16x96xf32>
      %c0_12 = arith.constant 0 : index
      %c0_13 = arith.constant 0 : index
      %13 = vector.load %arg5[%c0_12, %c0_13] : memref<1x96xf32, #tpu.memory_space<vmem>>, vector<1x96xf32>
      %14 = vector.broadcast %13 : vector<1x96xf32> to vector<16x96xf32>
      %15 = arith.addf %12, %14 : vector<16x96xf32>
      %c0_14 = arith.constant 0 : index
      %c0_15 = arith.constant 0 : index
      %16 = vector.load %arg6[%c0_14, %c0_15] : memref<16x96xf32, #tpu.memory_space<vmem>>, vector<16x96xf32>
      tpu.vector_store %arg6[%c0_14, %c0_15], %15 {strides = array<i32>} : memref<16x96xf32, #tpu.memory_space<vmem>>, vector<16x96xf32>,
    } else {
    }
    return
  }
  func.func @transform_0(%arg0: i32, %arg1: i32, %arg2: i32) -> (i32, i32) {
    %c0_i32 = arith.constant 0 : i32
    return %arg0, %arg2 : i32, i32
  }
  func.func @transform_1(%arg0: i32, %arg1: i32, %arg2: i32) -> (i32, i32) {
    %c0_i32 = arith.constant 0 : i32
    return %arg2, %arg1 : i32, i32
  }
  func.func @transform_2(%arg0: i32, %arg1: i32, %arg2: i32) -> (i32, i32) {
    %c0_i32 = arith.constant 0 : i32
    %c0_i32_0 = arith.constant 0 : i32
    return %c0_i32, %arg1 : i32, i32
  }
  func.func @transform_3(%arg0: i32, %arg1: i32, %arg2: i32) -> (i32, i32) {
    %c0_i32 = arith.constant 0 : i32
    return %arg0, %arg1 : i32, i32
  }
}

</mosaic_0001>

<bundles_post_ra>
// kernel: tpu_custom_call.1
= control target key start
LH: loop header
LB: loop body
LE: loop exit
PB: predicated region body
PF: predicated region fallthrough
CT: control target
= control target key end

     0   :  { %8 = vsyncpa [#allocation4], 0  ;;  %s416_s0 = inlined_call_operand.hbm [shape: f32[16,32], index: 0, kind: input, shape index: {}]   ;;  %s417_s1 = inlined_call_operand.hbm [shape: f32[32,96], index: 1, kind: input, shape index: {}]   ;;  %s418_s2 = inlined_call_operand.hbm [shape: f32[1,96], index: 2, kind: input, shape index: {}]   ;;  %s419_s3 = inlined_call_operand.hbm [shape: f32[16,96], index: 3, kind: output, shape index: {}]  }
   0x1   :  { %9 = vsyncpa [#allocation7], 0 }
   0x2   :  { %10 = vsyncpa [#allocation5], 0  ;;  %s319_s12 = smov [#allocation6]   ;;  %s320_s14 = smov [#allocation3]  }
   0x3   :  { %s28_s13 = sshll.u32 %s319_s12, 4  ;;  %s16_s15 = sshll.u32 %s320_s14, 4  ;;  %s29_s13 = int_to_ptr.vmem [resolvable:$true] %s28_s13  ;;  %s346_s15 = int_to_ptr.vmem [resolvable:$true] %s16_s15 }
   0x4   :  { %s225_s18 = scalar_lea.hbm %s417_s1, 512 }
   0x5   :  { %p226_p0 = scmp.ne.s32.totalorder %s417_s1, %s225_s18  ;;  %p229_p1 = scmp.lt.u32.totalorder %s225_s18, %s417_s1 }
   0x7   :  { %p231_p2 = pnand %p229_p1, %p226_p0 }
   0x9   :  { %234 = shalt.err (!%p231_p2)
}
   0xa   :  { %s235_s23 = scalar_lea.vmem %s29_s13, 512  ;;  %p240_p4 = scmp.lt.s32.totalorder %s29_s13, %s29_s13 }
   0xb   :  { %p236_p3 = scmp.ne.s32.totalorder %s29_s13, %s235_s23  ;;  %p241_p5 = scmp.lt.s32.totalorder %s235_s23, %s235_s23 }
   0xd   :  { %p242_p6 = por %p241_p5, %p240_p4 }
   0xf   :  { %p243_p7 = pnand %p242_p6, %p236_p3 }
  0x11   :  { %246 = shalt.err (!%p243_p7)
}
  0x12   :  { %s321_s24 = smov 128   ;;  %s322_s25 = smov 8  }
  0x13   :  { %34 = dma.hbm_to_vmem [thread:$0]  %s417_s1, 512, %s29_s13, [#allocation7], %s321_s24, %s321_s24, %s322_s25  }
  0x14   :  { %s247_s30 = scalar_lea.hbm %s416_s0, 256 }
  0x15   :  { %p248_p8 = scmp.ne.s32.totalorder %s416_s0, %s247_s30  ;;  %p251_p9 = scmp.lt.u32.totalorder %s247_s30, %s416_s0 }
  0x17   :  { %p253_p10 = pnand %p251_p9, %p248_p8 }
  0x19   :  { %256 = shalt.err (!%p253_p10)
}
  0x1a   :  { %s257_s8 = scalar_lea.vmem %s346_s15, 256  ;;  %p262_p12 = scmp.lt.s32.totalorder %s346_s15, %s346_s15 }
  0x1b   :  { %p258_p11 = scmp.ne.s32.totalorder %s346_s15, %s257_s8  ;;  %p263_p13 = scmp.lt.s32.totalorder %s257_s8, %s257_s8 }
  0x1d   :  { %p264_p0 = por %p263_p13, %p262_p12 }
  0x1f   :  { %p265_p1 = pnand %p264_p0, %p258_p11 }
  0x21   :  { %268 = shalt.err (!%p265_p1)
}
  0x22   :  { %22 = dma.hbm_to_vmem [thread:$0]  %s416_s0, 256, %s346_s15, [#allocation4], %s321_s24, %s321_s24, %s322_s25  }
  0x23   :  { %s323_s10 = smov [#allocation8]   ;;  %s269_s14 = scalar_lea.hbm %s418_s2, 16 }
  0x24   :  { %s41_s11 = sshll.u32 %s323_s10, 4  ;;  %p270_p2 = scmp.ne.s32.totalorder %s418_s2, %s269_s14  ;;  %s42_s11 = int_to_ptr.vmem [resolvable:$true] %s41_s11 }
  0x25   :  { %p273_p3 = scmp.lt.u32.totalorder %s269_s14, %s418_s2 }
  0x27   :  { %p275_p4 = pnand %p273_p3, %p270_p2 }
  0x29   :  { %278 = shalt.err (!%p275_p4)
}
  0x2a   :  { %s279_s20 = scalar_lea.vmem %s42_s11, 16  ;;  %s283_s0 = scalar_lea.vmem %s42_s11, 32 }
  0x2b   :  { %p280_p5 = scmp.ne.s32.totalorder %s42_s11, %s279_s20  ;;  %p284_p6 = scmp.lt.s32.totalorder %s42_s11, %s42_s11 }
  0x2c   :  { %p285_p7 = scmp.lt.s32.totalorder %s283_s0, %s279_s20 }
  0x2e   :  { %p286_p8 = por %p285_p7, %p284_p6 }
  0x30   :  { %p287_p9 = pnand %p286_p8, %p280_p5 }
  0x32   :  { %290 = shalt.err (!%p287_p9)
}
  0x33   :  { %44 = dma.hbm_to_vmem [thread:$0]  %s418_s2, 16, %s42_s11, [#allocation7]  }
  0x34   :  { %313 = dma.done.wait [#allocation4], 256  }
  0x35   :  { %314 = vsyncadd [#allocation4], 4294967040 }
  0x36   :  { %315 = dma.done.wait [#allocation7], 528  }
  0x37   :  { %316 = vsyncadd [#allocation7], 4294966768  ;;  %vm58_vm0 = vcmask 785408   ;;  %v324_v0 = vmov 0.0   ;;  %vm69_vm1 = vcmask 261120   ;;  %v65_v1 = vld [vmem:[#allocation6] sm:$0xff] }
  0x38   :  { %60 = vst.msk [vmem:[#allocation2 + $0x8] sm:$0xff] %vm58_vm0, %v324_v0  ;;  %59 = vst.msk [vmem:[#allocation2] sm:$0xff] %vm58_vm0, %v324_v0  ;;  %v66_v2 = vld [vmem:[#allocation6 + $0x8] sm:$0xff]  ;;  %v67_v3 = vld [vmem:[#allocation6 + $0x10] sm:$0xff]  ;;  %s325_s2 = smov [#allocation9]  }
  0x39   :  { %v210_v4 = vpack.c.bf16 %v66_v2, %v65_v1  ;;  %v68_v5 = vld [vmem:[#allocation6 + $0x18] sm:$0xff]  ;;  %v63_v6 = vld [vmem:[#allocation3] sm:$0xff]  ;;  %v192_v15 = vld [vmem:[#allocation8] ss:$0 sm:$0xff]  ;;  %s177_s22 = sshll.u32 %s325_s2, 4  ;;  %s178_s22 = int_to_ptr.vmem [resolvable:$true] %s177_s22 }
  0x3a   :  { %v214_v7 = vpack.c.bf16 %v68_v5, %v67_v3  ;;  %207 = vmatprep.mubr.msk.f32.mxu0 %vm69_vm1, %v63_v6  ;;  %v64_v8 = vld [vmem:[#allocation3 + $0x8] sm:$0xff]  ;;  %s291_s23 = scalar_lea.vmem %s178_s22, 256  ;;  %p296_p11 = scmp.lt.s32.totalorder %s178_s22, %s178_s22 }
  0x3b   :  { %211 = vmatprep.subr.bf16.mxu0 %v210_v4  ;;  %p292_p10 = scmp.ne.s32.totalorder %s178_s22, %s291_s23  ;;  %p297_p12 = scmp.lt.s32.totalorder %s291_s23, %s291_s23 }
  0x3c   :  { %213 = vmatpush3.bf16.msra.mxu0 %v210_v4 }
  0x3d   :  { %215 = vmatprep.subr.bf16.mxu0 %v214_v7  ;;  %p298_p13 = por %p297_p12, %p296_p11 }
  0x3f   :  { %v62_v9 = vld [vmem:[#allocation2 + $0x8] sm:$0xff]  ;;  %v61_v10 = vld [vmem:[#allocation2] sm:$0xff]  ;;  %p299_p0 = pnand %p298_p13, %p292_p10 }
  0x40   :  { %217 = vmatpush3.bf16.msra.mxu0 %v214_v7 }
  0x43   :  { %208 = vmatmul.mubr.msk.f32.vlgmr.msra.gmra.mrb[0].mxu0 %vm69_vm1, %v64_v8 }
 0x116   :  { %v209_v11 = vpop.f32.mrb[0].mxu0 }
 0x117   :  { %v152_v12 = vadd.f32 %v209_v11, %v62_v9  ;;  %v142_v13 = vpop.f32.mrb[1].mxu0 }
 0x118   :  { %v151_v14 = vadd.f32 %v142_v13, %v61_v10 }
 0x119   :  { %155 = vst.msk [vmem:[#allocation2 + $0x8] sm:$0xff] %vm58_vm0, %v152_v12 }
 0x11a   :  { %154 = vst.msk [vmem:[#allocation2] sm:$0xff] %vm58_vm0, %v151_v14 }
 0x120   :  { %v160_v16 = vld [vmem:[#allocation2 + $0x8] sm:$0xff] }
 0x121   :  { %v159_v17 = vld [vmem:[#allocation2] sm:$0xff]  ;;  %v169_v18 = vadd.f32 %v192_v15, %v160_v16 }
 0x122   :  { %v168_v19 = vadd.f32 %v192_v15, %v159_v17 }
 0x123   :  { %171 = vst.msk [vmem:[#allocation9 + $0x8] sm:$0xff] %vm58_vm0, %v169_v18 }
 0x124   :  { %170 = vst.msk [vmem:[#allocation9] sm:$0xff] %vm58_vm0, %v168_v19 }
 0x125   :  { %302 = shalt.err (!%p299_p0)
}
 0x126   :  { %s303_s28 = scalar_lea.hbm %s419_s3, 256 }
 0x127   :  { %p304_p1 = scmp.ne.s32.totalorder %s419_s3, %s303_s28  ;;  %p307_p2 = scmp.lt.u32.totalorder %s303_s28, %s419_s3 }
 0x129   :  { %p309_p3 = pnand %p307_p2, %p304_p1 }
 0x12b   :  { %312 = shalt.err (!%p309_p3)
}
 0x12c   :  { %183 = dma.vmem_to_hbm [thread:$0]  %s178_s22, 256, %s419_s3, [#allocation5], %s321_s24, %s321_s24, %s322_s25  }
 0x12d   :  { %317 = dma.done.wait [#allocation5], 256  }
 0x12e   :  { %318 = vsyncadd [#allocation5], 4294967040 }
 0x12f   :  { %187 = vsyncpa [#allocation4], 1 }
 0x130   :  { %188 = vsyncpa [#allocation7], 1 }
 0x131   :  { %189 = vsyncpa [#allocation5], 1 }

</bundles_post_ra>
